<compile_context>
chip_gen: v7x
topology: tpu7x:2x2x1
jax: 0.10.0
libtpu: 0.0.40
codegen_flags: <defaults>
</compile_context>

<pallas_src>
import math

import jax
import jax.numpy as jnp
from jax.experimental import pallas as pl
from jax.experimental.pallas import tpu as pltpu

# ----------------------------- configuration -------------------------------
PATCH = 4            # patch_size
IN_CHANS = 3         # in_chans
EMBED_DIM = 96       # embed_dim (module default)
E_PAD = 128          # lane-dense padded embed dim
EPS = 1e-5           # nn.LayerNorm default eps
B = 2                # batch
H_IN = W_IN = 16     # input spatial resolution


# ------------------------------ Pallas kernel -------------------------------
def _patch_embed_kernel(p_ref, w_ref, prm_ref, o_ref):
    # p_ref   : (TM, K)     bf16 flattened patches (K = Cin*ph*pw)
    # w_ref   : (K, E_PAD)  bf16 conv weight, im2col layout, zero-padded lanes
    # prm_ref : (8, E_PAD)  f32 packed params: row0=conv bias, row1=gamma, row2=beta
    # o_ref   : (TM, E_PAD) f32
    p = p_ref[...]
    w = w_ref[...]
    # Conv2d(kernel=stride=patch) == one matmul on the MXU (bf16 in, f32 acc).
    y = jnp.dot(p, w, preferred_element_type=jnp.float32) + prm_ref[0:1, :]
    # Fused one-pass LayerNorm stats over the REAL embed dim (padded lanes of y
    # are exactly zero, so the raw sums are already over the 96 real lanes).
    inv_e = 1.0 / EMBED_DIM
    sum_y = jnp.sum(y, axis=-1, keepdims=True)
    sum_y2 = jnp.sum(y * y, axis=-1, keepdims=True)
    mu = sum_y * inv_e
    var = jnp.maximum(sum_y2 * inv_e - mu * mu, 0.0)
    yn = (y - mu) * jax.lax.rsqrt(var + EPS)
    # gamma/beta padded with zeros -> padded output lanes are exactly 0.
    o_ref[...] = (yn * prm_ref[1:2, :] + prm_ref[2:3, :]).astype(o_ref.dtype)


def patch_embed_forward(x, conv_w, conv_b, gamma, beta):
    """x: (B, Cin, H, W) -> (B, E, Wh, Ww).  Matches PatchEmbed.forward with
    norm_layer=nn.LayerNorm."""
    Bb, Cin, Hh, Ww_ = x.shape
    ph = pw = PATCH
    E = EMBED_DIM

    # Same right/bottom zero padding as F.pad in the PyTorch module.
    pad_w = (pw - Ww_ % pw) % pw
    pad_h = (ph - Hh % ph) % ph
    if pad_w or pad_h:
        x = jnp.pad(x, ((0, 0), (0, 0), (0, pad_h), (0, pad_w)))
    Hp, Wp = x.shape[2], x.shape[3]
    Wh, Ww = Hp // ph, Wp // pw

    # im2col for stride==kernel conv: (B*Wh*Ww, Cin*ph*pw), inner order (c,dh,dw).
    # The bf16 cast fuses into this (single, tiny) wrapper layout op.
    K = Cin * ph * pw
    M = Bb * Wh * Ww
    patches = x.reshape(Bb, Cin, Wh, ph, Ww, pw)
    patches = patches.transpose(0, 2, 4, 1, 3, 5).reshape(M, K)
    patches = patches.astype(jnp.bfloat16)

    # Weight in im2col layout, lane-padded to 128, bf16.
    w2d = conv_w.reshape(E, K).T.astype(jnp.bfloat16)           # (K, E)
    w_pad = jnp.zeros((K, E_PAD), jnp.bfloat16).at[:, :E].set(w2d)

    # One packed (8, 128) f32 parameter slab: bias / gamma / beta (rows 0..2).
    params = jnp.zeros((8, E_PAD), jnp.float32)
    params = params.at[0, :E].set(conv_b)
    params = params.at[1, :E].set(gamma)
    params = params.at[2, :E].set(beta)

    # Tile the row (token) axis so the kernel scales to real image sizes.
    # At the toy size this is one grid step with the whole problem in VMEM.
    TM = M if M <= 512 else 512
    grid = (pl.cdiv(M, TM),)

    out = pl.pallas_call(
        _patch_embed_kernel,
        out_shape=jax.ShapeDtypeStruct((M, E_PAD), jnp.float32),
        grid=grid,
        in_specs=[
            pl.BlockSpec((TM, K), lambda i: (i, 0)),
            pl.BlockSpec((K, E_PAD), lambda i: (0, 0)),
            pl.BlockSpec((8, E_PAD), lambda i: (0, 0)),
        ],
        out_specs=pl.BlockSpec((TM, E_PAD), lambda i: (i, 0)),
        compiler_params=pltpu.CompilerParams(
            dimension_semantics=("parallel",)),
    )(patches, w_pad, params)

    # Back to the PyTorch output layout (B, E, Wh, Ww): slice the 96 real lanes
    # and repack -- a single fused XLA op, mandated by the module's contract.
    return out[:, :E].reshape(Bb, Wh, Ww, E).transpose(0, 3, 1, 2)


# --------------------------- pure-JAX reference -----------------------------
def ref_forward(x, conv_w, conv_b, gamma, beta):
    ph = pw = PATCH
    Bb, Cin, Hh, Ww_ = x.shape
    pad_w = (pw - Ww_ % pw) % pw
    pad_h = (ph - Hh % ph) % ph
    if pad_w or pad_h:
        x = jnp.pad(x, ((0, 0), (0, 0), (0, pad_h), (0, pad_w)))
    y = jax.lax.conv_general_dilated(
        x, conv_w, window_strides=(ph, pw), padding="VALID",
        dimension_numbers=("NCHW", "OIHW", "NCHW"))
    y = y + conv_b.reshape(1, -1, 1, 1)
    Bb, E, Wh, Ww = y.shape
    t = y.reshape(Bb, E, Wh * Ww).transpose(0, 2, 1)             # (B, L, E)
    mu = t.mean(-1, keepdims=True)
    var = jnp.square(t - mu).mean(-1, keepdims=True)
    t = (t - mu) / jnp.sqrt(var + EPS) * gamma + beta
    return t.transpose(0, 2, 1).reshape(Bb, E, Wh, Ww)


# ---------------------------------- main ------------------------------------
if __name__ == "__main__":
    key = jax.random.PRNGKey(0)
    k1, k2, k3, k4, k5 = jax.random.split(key, 5)

    fan_in = IN_CHANS * PATCH * PATCH
    bound = 1.0 / math.sqrt(fan_in)                 # torch Conv2d default init range
    conv_w = jax.random.uniform(k1, (EMBED_DIM, IN_CHANS, PATCH, PATCH),
                                jnp.float32, -bound, bound)
    conv_b = jax.random.uniform(k2, (EMBED_DIM,), jnp.float32, -bound, bound)
    # LayerNorm params (perturbed from the 1/0 init so the affine path is tested)
    gamma = 1.0 + 0.05 * jax.random.normal(k4, (EMBED_DIM,), jnp.float32)
    beta = 0.05 * jax.random.normal(k5, (EMBED_DIM,), jnp.float32)

    x = jax.random.normal(k3, (B, IN_CHANS, H_IN, W_IN), jnp.float32)

    out = jax.block_until_ready(patch_embed_forward(x, conv_w, conv_b, gamma, beta))
    ref = jax.block_until_ready(ref_forward(x, conv_w, conv_b, gamma, beta))

    assert out.shape == (B, EMBED_DIM, H_IN // PATCH, W_IN // PATCH), out.shape
    # bf16 MXU operands (f32 accumulation / f32 LN) vs the f32 reference:
    # tolerance loosened accordingly.
    err = float(jnp.max(jnp.abs(out - ref)))
    assert err < 5e-2, f"mismatch vs reference: {err}"

    print("KERNEL_OK")
</pallas_src>

<mosaic_0001>
module attributes {stable_mosaic.version = 11 : i64} {
  func.func @_patch_embed_kernel(%arg0: i32, %arg1: memref<32x48xbf16, #tpu.memory_space<vmem>>, %arg2: memref<48x128xbf16, #tpu.memory_space<vmem>>, %arg3: memref<8x128xf32, #tpu.memory_space<vmem>>, %arg4: memref<32x128xf32, #tpu.memory_space<vmem>>) attributes {dimension_semantics = [#tpu.dimension_semantics<parallel>], iteration_bounds = array<i64: 1>, scalar_prefetch = 0 : i64, scratch_operands = 0 : i64, tpu.core_type = #tpu.core_type<tc>, window_params = [{transform_indices = @transform_0, window_bounds = array<i64: 32, 48>}, {pipeline_mode = #tpu.pipeline_mode<synchronous>, transform_indices = @transform_1, window_bounds = array<i64: 48, 128>}, {pipeline_mode = #tpu.pipeline_mode<synchronous>, transform_indices = @transform_2, window_bounds = array<i64: 8, 128>}, {transform_indices = @transform_3, window_bounds = array<i64: 32, 128>}]} {
    %c0 = arith.constant 0 : index
    %c0_0 = arith.constant 0 : index
    %0 = vector.load %arg1[%c0, %c0_0] : memref<32x48xbf16, #tpu.memory_space<vmem>>, vector<32x48xbf16>
    %c0_1 = arith.constant 0 : index
    %c0_2 = arith.constant 0 : index
    %1 = vector.load %arg2[%c0_1, %c0_2] : memref<48x128xbf16, #tpu.memory_space<vmem>>, vector<48x128xbf16>
    %cst = arith.constant dense<0.000000e+00> : vector<32x128xf32>
    %2 = tpu.matmul %0, %1, %cst {dimension_numbers = #tpu.dot_dimension_numbers<[1], [0], [0], [1], [0, 0, 1, 1], [], []>} : vector<32x48xbf16>, vector<48x128xbf16>, vector<32x128xf32> -> vector<32x128xf32>
    %c0_3 = arith.constant 0 : index
    %c0_4 = arith.constant 0 : index
    %3 = vector.load %arg3[%c0_3, %c0_4] : memref<8x128xf32, #tpu.memory_space<vmem>>, vector<1x128xf32>
    %4 = vector.broadcast %3 : vector<1x128xf32> to vector<32x128xf32>
    %5 = arith.addf %2, %4 : vector<32x128xf32>
    %cst_5 = arith.constant dense<0.000000e+00> : vector<32xf32>
    %6 = vector.multi_reduction <add>, %5, %cst_5 [1] : vector<32x128xf32> to vector<32xf32>
    %7 = vector.shape_cast %6 : vector<32xf32> to vector<32x1xf32>
    %8 = arith.mulf %5, %5 : vector<32x128xf32>
    %cst_6 = arith.constant dense<0.000000e+00> : vector<32xf32>
    %9 = vector.multi_reduction <add>, %8, %cst_6 [1] : vector<32x128xf32> to vector<32xf32>
    %10 = vector.shape_cast %9 : vector<32xf32> to vector<32x1xf32>
    %cst_7 = arith.constant 0.010416667 : f32
    %11 = vector.broadcast %cst_7 : f32 to vector<32x1xf32>
    %12 = arith.mulf %7, %11 : vector<32x1xf32>
    %cst_8 = arith.constant 0.010416667 : f32
    %13 = vector.broadcast %cst_8 : f32 to vector<32x1xf32>
    %14 = arith.mulf %10, %13 : vector<32x1xf32>
    %15 = arith.mulf %12, %12 : vector<32x1xf32>
    %16 = arith.subf %14, %15 : vector<32x1xf32>
    %cst_9 = arith.constant 0.000000e+00 : f32
    %17 = vector.broadcast %cst_9 : f32 to vector<32x1xf32>
    %18 = arith.maximumf %16, %17 : vector<32x1xf32>
    %19 = vector.broadcast %12 : vector<32x1xf32> to vector<32x128xf32>
    %20 = arith.subf %5, %19 : vector<32x128xf32>
    %cst_10 = arith.constant 9.99999974E-6 : f32
    %21 = vector.broadcast %cst_10 : f32 to vector<32x1xf32>
    %22 = arith.addf %18, %21 : vector<32x1xf32>
    %23 = math.rsqrt %22 : vector<32x1xf32>
    %24 = vector.broadcast %23 : vector<32x1xf32> to vector<32x128xf32>
    %25 = arith.mulf %20, %24 : vector<32x128xf32>
    %c1 = arith.constant 1 : index
    %c0_11 = arith.constant 0 : index
    %26 = vector.load %arg3[%c1, %c0_11] : memref<8x128xf32, #tpu.memory_space<vmem>>, vector<1x128xf32>
    %27 = vector.broadcast %26 : vector<1x128xf32> to vector<32x128xf32>
    %28 = arith.mulf %25, %27 : vector<32x128xf32>
    %c2 = arith.constant 2 : index
    %c0_12 = arith.constant 0 : index
    %29 = vector.load %arg3[%c2, %c0_12] : memref<8x128xf32, #tpu.memory_space<vmem>>, vector<1x128xf32>
    %30 = vector.broadcast %29 : vector<1x128xf32> to vector<32x128xf32>
    %31 = arith.addf %28, %30 : vector<32x128xf32>
    %c0_13 = arith.constant 0 : index
    %c0_14 = arith.constant 0 : index
    %32 = vector.load %arg4[%c0_13, %c0_14] : memref<32x128xf32, #tpu.memory_space<vmem>>, vector<32x128xf32>
    tpu.vector_store %arg4[%c0_13, %c0_14], %31 {strides = array<i32>} : memref<32x128xf32, #tpu.memory_space<vmem>>, vector<32x128xf32>,
    return
  }
  func.func @transform_0(%arg0: i32) -> (i32, i32) {
    %c0_i32 = arith.constant 0 : i32
    %c0_i32_0 = arith.constant 0 : i32
    return %arg0, %c0_i32 : i32, i32
  }
  func.func @transform_1(%arg0: i32) -> (i32, i32) {
    %c0_i32 = arith.constant 0 : i32
    %c0_i32_0 = arith.constant 0 : i32
    %c0_i32_1 = arith.constant 0 : i32
    return %c0_i32, %c0_i32_0 : i32, i32
  }
  func.func @transform_2(%arg0: i32) -> (i32, i32) {
    %c0_i32 = arith.constant 0 : i32
    %c0_i32_0 = arith.constant 0 : i32
    %c0_i32_1 = arith.constant 0 : i32
    return %c0_i32, %c0_i32_0 : i32, i32
  }
  func.func @transform_3(%arg0: i32) -> (i32, i32) {
    %c0_i32 = arith.constant 0 : i32
    %c0_i32_0 = arith.constant 0 : i32
    return %arg0, %c0_i32 : i32, i32
  }
}

</mosaic_0001>

<bundles_post_ra>
// kernel: tpu_custom_call.1
= control target key start
LH: loop header
LB: loop body
LE: loop exit
PB: predicated region body
PF: predicated region fallthrough
CT: control target
= control target key end

     0   :  { %8 = vsyncpa [#allocation3], 0  ;;  %s485_s0 = inlined_call_operand.hbm [shape: bf16[32,48], index: 0, kind: input, shape index: {}]   ;;  %s486_s1 = inlined_call_operand.hbm [shape: bf16[48,128], index: 1, kind: input, shape index: {}]   ;;  %s487_s2 = inlined_call_operand.hbm [shape: f32[8,128], index: 2, kind: input, shape index: {}]   ;;  %s488_s3 = inlined_call_operand.hbm [shape: f32[32,128], index: 3, kind: output, shape index: {}]  }
   0x1   :  { %9 = vsyncpa [#allocation6], 0 }
   0x2   :  { %10 = vsyncpa [#allocation4], 0  ;;  %s390_s12 = smov [#allocation5]   ;;  %s391_s14 = smov [#allocation2]  }
   0x3   :  { %s28_s13 = sshll.u32 %s390_s12, 4  ;;  %s16_s15 = sshll.u32 %s391_s14, 4  ;;  %s29_s13 = int_to_ptr.vmem [resolvable:$true] %s28_s13  ;;  %s418_s15 = int_to_ptr.vmem [resolvable:$true] %s16_s15 }
   0x4   :  { %s296_s18 = scalar_lea.hbm %s486_s1, 384 }
   0x5   :  { %p297_p0 = scmp.ne.s32.totalorder %s486_s1, %s296_s18  ;;  %p300_p1 = scmp.lt.u32.totalorder %s296_s18, %s486_s1 }
   0x7   :  { %p302_p2 = pnand %p300_p1, %p297_p0 }
   0x9   :  { %305 = shalt.err (!%p302_p2)
}
   0xa   :  { %s306_s23 = scalar_lea.vmem %s29_s13, 384  ;;  %p311_p4 = scmp.lt.s32.totalorder %s29_s13, %s29_s13 }
   0xb   :  { %p307_p3 = scmp.ne.s32.totalorder %s29_s13, %s306_s23  ;;  %p312_p5 = scmp.lt.s32.totalorder %s306_s23, %s306_s23 }
   0xd   :  { %p313_p6 = por %p312_p5, %p311_p4 }
   0xf   :  { %p314_p7 = pnand %p313_p6, %p307_p3 }
  0x11   :  { %317 = shalt.err (!%p314_p7)
}
  0x12   :  { %s392_s24 = smov 64   ;;  %s393_s25 = smov 4  }
  0x13   :  { %34 = dma.hbm_to_vmem [thread:$0]  %s486_s1, 384, %s29_s13, [#allocation6], %s392_s24, %s392_s24, %s393_s25  }
  0x14   :  { %s318_s30 = scalar_lea.hbm %s485_s0, 256 }
  0x15   :  { %p319_p8 = scmp.ne.s32.totalorder %s485_s0, %s318_s30  ;;  %p322_p9 = scmp.lt.u32.totalorder %s318_s30, %s485_s0 }
  0x17   :  { %p324_p10 = pnand %p322_p9, %p319_p8 }
  0x19   :  { %327 = shalt.err (!%p324_p10)
}
  0x1a   :  { %s328_s8 = scalar_lea.vmem %s418_s15, 256  ;;  %p333_p12 = scmp.lt.s32.totalorder %s418_s15, %s418_s15 }
  0x1b   :  { %p329_p11 = scmp.ne.s32.totalorder %s418_s15, %s328_s8  ;;  %p334_p13 = scmp.lt.s32.totalorder %s328_s8, %s328_s8 }
  0x1d   :  { %p335_p0 = por %p334_p13, %p333_p12 }
  0x1f   :  { %p336_p1 = pnand %p335_p0, %p329_p11 }
  0x21   :  { %339 = shalt.err (!%p336_p1)
}
  0x22   :  { %22 = dma.hbm_to_vmem [thread:$0]  %s485_s0, 256, %s418_s15, [#allocation3], %s392_s24, %s392_s24, %s393_s25  }
  0x23   :  { %s394_s10 = smov [#allocation7]   ;;  %s340_s14 = scalar_lea.hbm %s487_s2, 128 }
  0x24   :  { %s41_s11 = sshll.u32 %s394_s10, 4  ;;  %p341_p2 = scmp.ne.s32.totalorder %s487_s2, %s340_s14  ;;  %s42_s11 = int_to_ptr.vmem [resolvable:$true] %s41_s11 }
  0x25   :  { %p344_p3 = scmp.lt.u32.totalorder %s340_s14, %s487_s2 }
  0x27   :  { %p346_p4 = pnand %p344_p3, %p341_p2 }
  0x29   :  { %349 = shalt.err (!%p346_p4)
}
  0x2a   :  { %s350_s20 = scalar_lea.vmem %s42_s11, 128  ;;  %p355_p6 = scmp.lt.s32.totalorder %s42_s11, %s42_s11 }
  0x2b   :  { %p351_p5 = scmp.ne.s32.totalorder %s42_s11, %s350_s20  ;;  %p356_p7 = scmp.lt.s32.totalorder %s350_s20, %s350_s20 }
  0x2d   :  { %p357_p8 = por %p356_p7, %p355_p6 }
  0x2f   :  { %p358_p9 = pnand %p357_p8, %p351_p5 }
  0x31   :  { %361 = shalt.err (!%p358_p9)
}
  0x32   :  { %44 = dma.hbm_to_vmem [thread:$0]  %s487_s2, 128, %s42_s11, [#allocation6]  }
  0x33   :  { %384 = dma.done.wait [#allocation3], 256  }
  0x34   :  { %385 = vsyncadd [#allocation3], 4294967040 }
  0x35   :  { %386 = dma.done.wait [#allocation6], 512  }
  0x36   :  { %387 = vsyncadd [#allocation6], 4294966784  ;;  %v283_v0 = vld [vmem:[#allocation5] sm:$0xff]   ;;  %v284_v1 = vld [vmem:[#allocation5 + $0x8] sm:$0xff]   ;;  %vm98_vm0 = vcmask 392192   ;;  %s395_s2 = smov [#allocation8]  }
  0x37   :  { %265 = vmatprep.subr.bf16.mxu0 %v283_v0  ;;  %v286_v2 = vld [vmem:[#allocation2] sm:$0xff]   ;;  %v287_v4 = vld [vmem:[#allocation2 + $0x8] sm:$0xff]   ;;  %s237_s21 = sshll.u32 %s395_s2, 4  ;;  %s238_s21 = int_to_ptr.vmem [resolvable:$true] %s237_s21 }
  0x38   :  { %266 = vmatpush3.bf16.msra.mxu0 %v283_v0  ;;  %v285_v3 = vld [vmem:[#allocation5 + $0x10] sm:$0xff]   ;;  %271 = vmatprep.mubr.msk.bf16.mxu0 %vm98_vm0, %v286_v2  ;;  %v250_v5 = vld [vmem:[#allocation7] ss:$0 sm:$0xff]  ;;  %v258_v53 = vld [vmem:[#allocation7 + $0x1] ss:$0 sm:$0xff]  ;;  %s362_s22 = scalar_lea.vmem %s238_s21, 512  ;;  %p367_p11 = scmp.lt.s32.totalorder %s238_s21, %s238_s21 }
  0x39   :  { %267 = vmatprep.subr.bf16.mxu0 %v284_v1  ;;  %v259_v57 = vld [vmem:[#allocation7 + $0x2] ss:$0 sm:$0xff]  ;;  %p363_p10 = scmp.ne.s32.totalorder %s238_s21, %s362_s22  ;;  %p368_p12 = scmp.lt.s32.totalorder %s362_s22, %s362_s22 }
  0x3b   :  { %p369_p13 = por %p368_p12, %p367_p11 }
  0x3c   :  { %268 = vmatpush3.bf16.msra.mxu0 %v284_v1 }
  0x3d   :  { %269 = vmatprep.subr.bf16.mxu0 %v285_v3  ;;  %p370_p0 = pnand %p369_p13, %p363_p10 }
  0x40   :  { %270 = vmatpush3.bf16.msra.mxu0 %v285_v3 }
  0x43   :  { %272 = vmatmul.mubr.msk.bf16.vlgmr.msra.gmra.mrb[0].mxu0 %vm98_vm0, %v287_v4 }
 0x116   :  { %v273_v6 = vpop.f32.mrb[0].mxu0 }
 0x117   :  { %v461_v7 = vadd.f32 %v273_v6, %v250_v5  ;;  %v139_v8 = vpop.f32.mrb[1].mxu0 }
 0x118   :  { %v140_v9 = vadd.f32 %v250_v5, %v139_v8  ;;  %v274_v10 = vpop.f32.mrb[2].mxu0 }
 0x119   :  { %158 = vadd.xlane.f32.xlu1 %v461_v7  ;;  %v142_v11 = vpop.f32.mrb[3].mxu0  ;;  %v464_v12 = vadd.f32 %v274_v10, %v250_v5  ;;  %v164_v17 = vmul.f32 %v461_v7, %v461_v7 }
 0x11a   :  { %154 = vadd.xlane.f32.xlu0 %v140_v9  ;;  %v143_v13 = vadd.f32 %v250_v5, %v142_v11  ;;  %v162_v15 = vmul.f32 %v140_v9, %v140_v9 }
 0x11b   :  { %v165_v16 = vmul.f32 %v464_v12, %v464_v12 }
 0x11c   :  { %v163_v14 = vmul.f32 %v143_v13, %v143_v13 }
 0x11d   :  { %160 = vadd.xlane.f32.xlu1 %v464_v12 }
 0x11e   :  { %156 = vadd.xlane.f32.xlu0 %v143_v13 }
 0x121   :  { %168 = vadd.xlane.f32.xlu1 %v163_v14 }
 0x122   :  { %166 = vadd.xlane.f32.xlu0 %v162_v15 }
 0x125   :  { %172 = vadd.xlane.f32.xlu1 %v165_v16 }
 0x126   :  { %170 = vadd.xlane.f32.xlu0 %v164_v17 }
 0x1a6   :  { %v159_v18 = vpop.xlane.xlu1 %158 }
 0x1a7   :  { %v155_v19 = vpop.xlane.xlu0 %154  ;;  %v176_v29 = vmul.f32 0.010416667, %v159_v18 }
 0x1a8   :  { %v174_v22 = vmul.f32 0.010416667, %v155_v19 }
 0x1a9   :  { %v184_v39 = vmul.f32 %v176_v29, %v176_v29  ;;  %v196_v61 = vsub.f32 %v461_v7, %v176_v29 }
 0x1aa   :  { %v161_v20 = vpop.xlane.xlu1 %160  ;;  %v182_v30 = vmul.f32 %v174_v22, %v174_v22  ;;  %v194_v52 = vsub.f32 %v140_v9, %v174_v22 }
 0x1ab   :  { %v157_v21 = vpop.xlane.xlu0 %156  ;;  %v177_v26 = vmul.f32 0.010416667, %v161_v20 }
 0x1ac   :  { %v175_v23 = vmul.f32 0.010416667, %v157_v21 }
 0x1ad   :  { %v185_v35 = vmul.f32 %v177_v26, %v177_v26  ;;  %v197_v58 = vsub.f32 %v464_v12, %v177_v26 }
 0x1ae   :  { %v183_v24 = vmul.f32 %v175_v23, %v175_v23  ;;  %v169_v25 = vpop.xlane.xlu1 %168  ;;  %v195_v50 = vsub.f32 %v143_v13, %v175_v23 }
 0x1af   :  { %v179_v27 = vmul.f32 0.010416667, %v169_v25  ;;  %v167_v28 = vpop.xlane.xlu0 %166 }
 0x1b0   :  { %v178_v31 = vmul.f32 0.010416667, %v167_v28 }
 0x1b1   :  { %v187_v32 = vsub.f32 %v179_v27, %v183_v24 }
 0x1b2   :  { %v186_v33 = vsub.f32 %v178_v31, %v182_v30  ;;  %v173_v34 = vpop.xlane.xlu1 %172 }
 0x1b3   :  { %v191_v36 = vmax.f32 %v187_v32, 0.0  ;;  %v181_v37 = vmul.f32 0.010416667, %v173_v34  ;;  %v171_v38 = vpop.xlane.xlu0 %170 }
 0x1b4   :  { %v190_v40 = vmax.f32 %v186_v33, 0.0  ;;  %v180_v41 = vmul.f32 0.010416667, %v171_v38 }
 0x1b5   :  { %v199_v42 = vadd.f32 1e-05, %v191_v36  ;;  %v189_v43 = vsub.f32 %v181_v37, %v185_v35 }
 0x1b6   :  { %v198_v44 = vadd.f32 1e-05, %v190_v40  ;;  %v188_v45 = vsub.f32 %v180_v41, %v184_v39 }
 0x1b7   :  { %288 = vrsqrt.f32 %v199_v42  ;;  %v193_v46 = vmax.f32 %v189_v43, 0.0 }
 0x1b8   :  { %290 = vrsqrt.f32 %v198_v44  ;;  %v192_v47 = vmax.f32 %v188_v45, 0.0 }
 0x1b9   :  { %v201_v48 = vadd.f32 1e-05, %v193_v46 }
 0x1ba   :  { %v200_v49 = vadd.f32 1e-05, %v192_v47 }
 0x1bb   :  { %292 = vrsqrt.f32 %v201_v48 }
 0x1bc   :  { %294 = vrsqrt.f32 %v200_v49 }
 0x1c1   :  { %v289_v51 = vpop.eup %288 }
 0x1c2   :  { %v291_v54 = vpop.eup %290  ;;  %v207_v55 = vmul.f32 %v289_v51, %v195_v50 }
 0x1c3   :  { %v206_v56 = vmul.f32 %v291_v54, %v194_v52 }
 0x1c4   :  { %v216_v59 = vmul.f32 %v258_v53, %v207_v55 }
 0x1c5   :  { %v293_v60 = vpop.eup %292  ;;  %v215_v62 = vmul.f32 %v258_v53, %v206_v56 }
 0x1c6   :  { %v295_v63 = vpop.eup %294  ;;  %v209_v0 = vmul.f32 %v293_v60, %v197_v58  ;;  %v225_v1 = vadd.f32 %v259_v57, %v216_v59 }
 0x1c7   :  { %v208_v2 = vmul.f32 %v295_v63, %v196_v61  ;;  %v224_v3 = vadd.f32 %v259_v57, %v215_v62 }
 0x1c8   :  { %v218_v4 = vmul.f32 %v258_v53, %v209_v0  ;;  %229 = vst [vmem:[#allocation8 + $0x8] sm:$0xff] %v225_v1 }
 0x1c9   :  { %v217_v5 = vmul.f32 %v258_v53, %v208_v2  ;;  %228 = vst [vmem:[#allocation8] sm:$0xff] %v224_v3 }
 0x1ca   :  { %v227_v6 = vadd.f32 %v259_v57, %v218_v4 }
 0x1cb   :  { %v226_v8 = vadd.f32 %v259_v57, %v217_v5 }
 0x1cc   :  { %231 = vst [vmem:[#allocation8 + $0x18] sm:$0xff] %v227_v6 }
 0x1cd   :  { %230 = vst [vmem:[#allocation8 + $0x10] sm:$0xff] %v226_v8 }
 0x1ce   :  { %373 = shalt.err (!%p370_p0)
}
 0x1cf   :  { %s374_s25 = scalar_lea.hbm %s488_s3, 512 }
 0x1d0   :  { %p375_p1 = scmp.ne.s32.totalorder %s488_s3, %s374_s25  ;;  %p378_p2 = scmp.lt.u32.totalorder %s374_s25, %s488_s3 }
 0x1d2   :  { %p380_p3 = pnand %p378_p2, %p375_p1 }
 0x1d4   :  { %383 = shalt.err (!%p380_p3)
}
 0x1d5   :  { %s396_s30 = smov 128   ;;  %s397_s4 = smov 8  }
 0x1d6   :  { %243 = dma.vmem_to_hbm [thread:$0]  %s238_s21, 512, %s488_s3, [#allocation4], %s396_s30, %s396_s30, %s397_s4  }
 0x1d7   :  { %388 = dma.done.wait [#allocation4], 512  }
 0x1d8   :  { %389 = vsyncadd [#allocation4], 4294966784 }
 0x1d9   :  { %247 = vsyncpa [#allocation3], 1 }
 0x1da   :  { %248 = vsyncpa [#allocation6], 1 }
 0x1db   :  { %249 = vsyncpa [#allocation4], 1 }

</bundles_post_ra>
